<compile_context>
chip_gen: v7x
topology: tpu7x:2x2x1
jax: 0.10.0
libtpu: 0.0.40
codegen_flags: <defaults>
</compile_context>

<pallas_src>
import functools

import numpy as np
import jax
import jax.numpy as jnp
from jax import lax
from jax.experimental import pallas as pl
from jax.experimental.pallas import tpu as pltpu

N_FFT = 111
ALPHA = 1.0
OVERLAP = 0.75
EPS = 1e-7
HOP = int(N_FFT * (1 - OVERLAP))      # 27
N_BINS = N_FFT // 2 + 1               # 56 (onesided)

K_PAD = 128                           # padded frame length (contraction dim)
NB_PAD = 128                          # power-spectrum lane width (bins 0..55 used)
TILE_R_MAX = 2048                     # frame-row tile upper bound (sweep 1024-4096)
CHUNK_MAX = 256                       # inner accumulation chunk (rows per fori step)
NUM_CORES = 2                         # leading 'parallel' grid axis (v7x megacore)


def _round_up(x, m):
    return ((x + m - 1) // m) * m


def _packed_dft():
    """Windowed DFT matrix: cos bins in lanes 0..55, sin bins in lanes 128..183."""
    n = np.arange(N_FFT)
    k = np.arange(N_BINS)
    w = 0.5 - 0.5 * np.cos(2.0 * np.pi * n / N_FFT)   # periodic Hann (torch default)
    ang = 2.0 * np.pi * np.outer(n, k) / N_FFT        # (N_FFT, N_BINS)
    m = np.zeros((K_PAD, 2 * NB_PAD), np.float32)
    m[:N_FFT, :N_BINS] = w[:, None] * np.cos(ang)
    m[:N_FFT, NB_PAD:NB_PAD + N_BINS] = w[:, None] * np.sin(ang)
    return jnp.asarray(m, dtype=jnp.bfloat16)


def _frame_rows(x, n_frames, rows_pad):
    """(B, T) -> (rows_pad, 128) frames in one gather (torch.stft center=True).

    Frames are 128 samples long (instead of 111); the trailing samples hit DFT
    rows 111..127 which are zero, so results are identical.  Padded rows
    (>= B*n_frames) gather from an appended zero region -> all-zero frames.
    """
    B = x.shape[0]
    pad = N_FFT // 2
    xp = jnp.pad(x, ((0, 0), (pad, pad)), mode="reflect")   # (B, T + 110)
    L = xp.shape[1]
    flat = jnp.concatenate([xp.reshape(-1), jnp.zeros((K_PAD,), x.dtype)])
    r = jnp.arange(rows_pad)
    b = r // n_frames
    f = r - b * n_frames
    start = jnp.where(r < B * n_frames, b * L + f * HOP, B * L)
    idx = start[:, None] + jnp.arange(K_PAD)[None, :]
    return flat[idx]                                          # (rows_pad, 128)


def _sss_kernel(ft_ref, fp_ref, cs_ref, d_ref, n_ref, l_ref, *, chunk, n_chunks):
    i = pl.program_id(1)                       # inner ('arbitrary') reduction axis

    @pl.when(i == 0)
    def _():
        d_ref[...] = jnp.zeros_like(d_ref)
        n_ref[...] = jnp.zeros_like(n_ref)
        l_ref[...] = jnp.zeros_like(l_ref)

    cs = cs_ref[...]                           # (128, 256) bf16, grid-resident

    def psum8(x):                              # (chunk, 128) -> (8, 128)
        return jnp.sum(x.reshape(chunk // 8, 8, NB_PAD), axis=0)

    def body(c, carry):
        r0 = pl.multiple_of(c * chunk, chunk)
        yt = jnp.dot(ft_ref[pl.ds(r0, chunk), :], cs,
                     preferred_element_type=jnp.float32)      # (chunk, 256)
        yp = jnp.dot(fp_ref[pl.ds(r0, chunk), :], cs,
                     preferred_element_type=jnp.float32)
        # vreg-aligned 128-lane halves: cos part + sin part -> power spectrum.
        s_true = yt[:, :NB_PAD] * yt[:, :NB_PAD] + yt[:, NB_PAD:] * yt[:, NB_PAD:]
        s_pred = yp[:, :NB_PAD] * yp[:, :NB_PAD] + yp[:, NB_PAD:] * yp[:, NB_PAD:]
        diff = s_true - s_pred
        # two-log form: pure EUP, and padded/zero lanes contribute exactly 0.
        log_diff = jnp.log(s_true + EPS) - jnp.log(s_pred + EPS)
        d_ref[...] += psum8(diff * diff)
        n_ref[...] += psum8(s_true * s_true)
        l_ref[...] += psum8(jnp.abs(log_diff))
        return carry

    lax.fori_loop(0, n_chunks, body, 0)


def sss_loss(x_true, x_pred):
    # match torch: truncate both signals to the common (trailing) length
    min_len = min(x_true.shape[1], x_pred.shape[1])
    x_true = x_true[:, -min_len:].astype(jnp.bfloat16)
    x_pred = x_pred[:, -min_len:].astype(jnp.bfloat16)
    B = x_true.shape[0]

    pad = N_FFT // 2
    n_frames = 1 + (min_len + 2 * pad - N_FFT) // HOP
    rows = B * n_frames

    # ---- adaptive tiling (avoid huge padded work on short signals) ----------
    tile_1core = min(TILE_R_MAX, _round_up(rows, 8))
    num_cores = NUM_CORES if rows >= NUM_CORES * tile_1core else 1
    tile_r = min(TILE_R_MAX, _round_up(-(-rows // num_cores), 8))
    chunk = min(CHUNK_MAX, tile_r)
    tile_r = _round_up(tile_r, chunk)
    step = num_cores * tile_r
    rows_pad = _round_up(rows, step)
    inner = rows_pad // step                   # row tiles per core

    # ---- framing: one gather, no extra pad passes over the expanded frames --
    ft = _frame_rows(x_true, n_frames, rows_pad)          # (rows_pad, 128) bf16
    fp = _frame_rows(x_pred, n_frames, rows_pad)
    cs = _packed_dft()                                    # (128, 256) bf16

    row_map = lambda c, i: (c * inner + i, 0)
    acc_spec = pl.BlockSpec((8, NB_PAD), lambda c, i: (c, 0))
    acc_shape = jax.ShapeDtypeStruct((num_cores * 8, NB_PAD), jnp.float32)

    kernel = functools.partial(_sss_kernel, chunk=chunk, n_chunks=tile_r // chunk)

    out_d, out_n, out_l = pl.pallas_call(
        kernel,
        out_shape=(acc_shape, acc_shape, acc_shape),
        grid_spec=pltpu.PrefetchScalarGridSpec(
            num_scalar_prefetch=0,
            grid=(num_cores, inner),
            in_specs=[
                pl.BlockSpec((tile_r, K_PAD), row_map),
                pl.BlockSpec((tile_r, K_PAD), row_map),
                pl.BlockSpec((K_PAD, 2 * NB_PAD), lambda c, i: (0, 0)),
            ],
            out_specs=(acc_spec, acc_spec, acc_spec),
        ),
        compiler_params=pltpu.CompilerParams(
            dimension_semantics=("parallel", "arbitrary"),
            vmem_limit_bytes=32 * 1024 * 1024,   # guardrail; actual use ~3-4 MiB
        ),
    )(ft, fp, cs)

    # all padded rows / lanes contribute exactly zero, so the sums are exact
    d_sum = jnp.sum(out_d)
    n_sum = jnp.sum(out_n)
    l_sum = jnp.sum(out_l)

    n_elems = B * N_BINS * n_frames            # real (unpadded) element count
    converge_term = jnp.sqrt(d_sum) / (jnp.sqrt(n_sum) + EPS)
    log_term = l_sum / n_elems
    return converge_term + ALPHA * log_term


def sss_loss_ref(x_true, x_pred):
    """Pure-JAX f32 reference mirroring the torch module, for a sanity check."""
    min_len = min(x_true.shape[1], x_pred.shape[1])
    x_true = x_true[:, -min_len:]
    x_pred = x_pred[:, -min_len:]
    pad = N_FFT // 2

    def frame(x):
        xp = jnp.pad(x, ((0, 0), (pad, pad)), mode="reflect")
        nf = 1 + (xp.shape[1] - N_FFT) // HOP
        idx = jnp.arange(nf)[:, None] * HOP + jnp.arange(N_FFT)[None, :]
        return xp[:, idx]

    ft, fp = frame(x_true), frame(x_pred)
    n = np.arange(N_FFT)
    k = np.arange(N_BINS)
    w = 0.5 - 0.5 * np.cos(2.0 * np.pi * n / N_FFT)
    ang = 2.0 * np.pi * np.outer(n, k) / N_FFT
    c = jnp.asarray((w[:, None] * np.cos(ang)).astype(np.float32))
    s = jnp.asarray((w[:, None] * np.sin(ang)).astype(np.float32))

    def spec(fr):
        re = jnp.einsum("bfn,nk->bfk", fr, c)
        im = jnp.einsum("bfn,nk->bfk", fr, s)
        return re * re + im * im

    st, sp = spec(ft), spec(fp)
    converge = jnp.sqrt(jnp.sum((st - sp) ** 2)) / (jnp.sqrt(jnp.sum(st ** 2)) + EPS)
    log_term = jnp.mean(jnp.abs(jnp.log(st + EPS) - jnp.log(sp + EPS)))
    return converge + ALPHA * log_term


if __name__ == "__main__":
    key = jax.random.PRNGKey(0)
    k1, k2 = jax.random.split(key)
    x_true = jax.random.normal(k1, (2, 256), dtype=jnp.float32)
    x_pred = jax.random.normal(k2, (2, 300), dtype=jnp.float32)  # longer; trailing slice

    loss = sss_loss(x_true, x_pred)
    jax.block_until_ready(loss)

    ref = sss_loss_ref(x_true, x_pred)
    # tolerance loosened vs. the f32 reference because the kernel feeds bf16
    # frames / DFT matrices to the MXU (all post-matmul math stays in f32).
    np.testing.assert_allclose(np.asarray(loss), np.asarray(ref),
                               rtol=2e-2, atol=2e-3)
    print("KERNEL_OK")
</pallas_src>

<mosaic_0001>
module attributes {stable_mosaic.version = 11 : i64} {
  func.func @_sss_kernel(%arg0: i32, %arg1: i32, %arg2: memref<24x128xbf16, #tpu.memory_space<vmem>>, %arg3: memref<24x128xbf16, #tpu.memory_space<vmem>>, %arg4: memref<128x256xbf16, #tpu.memory_space<vmem>>, %arg5: memref<8x128xf32, #tpu.memory_space<vmem>>, %arg6: memref<8x128xf32, #tpu.memory_space<vmem>>, %arg7: memref<8x128xf32, #tpu.memory_space<vmem>>) attributes {dimension_semantics = [#tpu.dimension_semantics<parallel>, #tpu.dimension_semantics<arbitrary>], iteration_bounds = array<i64: 1, 1>, scalar_prefetch = 0 : i64, scratch_operands = 0 : i64, tpu.core_type = #tpu.core_type<tc>, window_params = [{transform_indices = @transform_0, window_bounds = array<i64: 24, 128>}, {transform_indices = @transform_1, window_bounds = array<i64: 24, 128>}, {pipeline_mode = #tpu.pipeline_mode<synchronous>, transform_indices = @transform_2, window_bounds = array<i64: 128, 256>}, {transform_indices = @transform_3, window_bounds = array<i64: 8, 128>}, {transform_indices = @transform_4, window_bounds = array<i64: 8, 128>}, {transform_indices = @transform_5, window_bounds = array<i64: 8, 128>}]} {
    %c0_i32 = arith.constant 0 : i32
    %0 = arith.cmpi eq, %arg1, %c0_i32 : i32
    %1 = arith.extui %0 : i1 to i32
    %c0_i32_0 = arith.constant 0 : i32
    %2 = arith.cmpi ne, %1, %c0_i32_0 : i32
    scf.if %2 {
      %cst_23 = arith.constant 0.000000e+00 : f32
      %52 = vector.broadcast %cst_23 : f32 to vector<8x128xf32>
      %c0_24 = arith.constant 0 : index
      %c0_25 = arith.constant 0 : index
      %53 = vector.load %arg5[%c0_24, %c0_25] : memref<8x128xf32, #tpu.memory_space<vmem>>, vector<8x128xf32>
      tpu.vector_store %arg5[%c0_24, %c0_25], %52 {strides = array<i32>} : memref<8x128xf32, #tpu.memory_space<vmem>>, vector<8x128xf32>,
      %cst_26 = arith.constant 0.000000e+00 : f32
      %54 = vector.broadcast %cst_26 : f32 to vector<8x128xf32>
      %c0_27 = arith.constant 0 : index
      %c0_28 = arith.constant 0 : index
      %55 = vector.load %arg6[%c0_27, %c0_28] : memref<8x128xf32, #tpu.memory_space<vmem>>, vector<8x128xf32>
      tpu.vector_store %arg6[%c0_27, %c0_28], %54 {strides = array<i32>} : memref<8x128xf32, #tpu.memory_space<vmem>>, vector<8x128xf32>,
      %cst_29 = arith.constant 0.000000e+00 : f32
      %56 = vector.broadcast %cst_29 : f32 to vector<8x128xf32>
      %c0_30 = arith.constant 0 : index
      %c0_31 = arith.constant 0 : index
      %57 = vector.load %arg7[%c0_30, %c0_31] : memref<8x128xf32, #tpu.memory_space<vmem>>, vector<8x128xf32>
      tpu.vector_store %arg7[%c0_30, %c0_31], %56 {strides = array<i32>} : memref<8x128xf32, #tpu.memory_space<vmem>>, vector<8x128xf32>,
    } else {
    }
    %c0 = arith.constant 0 : index
    %c0_1 = arith.constant 0 : index
    %3 = vector.load %arg4[%c0, %c0_1] : memref<128x256xbf16, #tpu.memory_space<vmem>>, vector<128x256xbf16>
    %c0_i32_2 = arith.constant 0 : i32
    %c24_i32 = arith.constant 24 : i32
    %4 = arith.muli %c0_i32_2, %c24_i32 : i32
    %5 = tpu.assume_multiple %4, 24 : i32
    %6 = arith.index_cast %5 : i32 to index
    %c0_3 = arith.constant 0 : index
    %7 = vector.load %arg2[%6, %c0_3] : memref<24x128xbf16, #tpu.memory_space<vmem>>, vector<24x128xbf16>
    %cst = arith.constant dense<0.000000e+00> : vector<24x256xf32>
    %8 = tpu.matmul %7, %3, %cst {dimension_numbers = #tpu.dot_dimension_numbers<[1], [0], [0], [1], [0, 0, 1, 1], [], []>} : vector<24x128xbf16>, vector<128x256xbf16>, vector<24x256xf32> -> vector<24x256xf32>
    %9 = arith.index_cast %5 : i32 to index
    %c0_4 = arith.constant 0 : index
    %10 = vector.load %arg3[%9, %c0_4] : memref<24x128xbf16, #tpu.memory_space<vmem>>, vector<24x128xbf16>
    %cst_5 = arith.constant dense<0.000000e+00> : vector<24x256xf32>
    %11 = tpu.matmul %10, %3, %cst_5 {dimension_numbers = #tpu.dot_dimension_numbers<[1], [0], [0], [1], [0, 0, 1, 1], [], []>} : vector<24x128xbf16>, vector<128x256xbf16>, vector<24x256xf32> -> vector<24x256xf32>
    %12 = vector.extract_strided_slice %8 {offsets = [0, 0], sizes = [24, 128], strides = [1, 1]} : vector<24x256xf32> to vector<24x128xf32>
    %13 = vector.extract_strided_slice %8 {offsets = [0, 0], sizes = [24, 128], strides = [1, 1]} : vector<24x256xf32> to vector<24x128xf32>
    %14 = arith.mulf %12, %13 : vector<24x128xf32>
    %15 = vector.extract_strided_slice %8 {offsets = [0, 128], sizes = [24, 128], strides = [1, 1]} : vector<24x256xf32> to vector<24x128xf32>
    %16 = vector.extract_strided_slice %8 {offsets = [0, 128], sizes = [24, 128], strides = [1, 1]} : vector<24x256xf32> to vector<24x128xf32>
    %17 = arith.mulf %15, %16 : vector<24x128xf32>
    %18 = arith.addf %14, %17 : vector<24x128xf32>
    %19 = vector.extract_strided_slice %11 {offsets = [0, 0], sizes = [24, 128], strides = [1, 1]} : vector<24x256xf32> to vector<24x128xf32>
    %20 = vector.extract_strided_slice %11 {offsets = [0, 0], sizes = [24, 128], strides = [1, 1]} : vector<24x256xf32> to vector<24x128xf32>
    %21 = arith.mulf %19, %20 : vector<24x128xf32>
    %22 = vector.extract_strided_slice %11 {offsets = [0, 128], sizes = [24, 128], strides = [1, 1]} : vector<24x256xf32> to vector<24x128xf32>
    %23 = vector.extract_strided_slice %11 {offsets = [0, 128], sizes = [24, 128], strides = [1, 1]} : vector<24x256xf32> to vector<24x128xf32>
    %24 = arith.mulf %22, %23 : vector<24x128xf32>
    %25 = arith.addf %21, %24 : vector<24x128xf32>
    %26 = arith.subf %18, %25 : vector<24x128xf32>
    %cst_6 = arith.constant 1.000000e-07 : f32
    %27 = vector.broadcast %cst_6 : f32 to vector<24x128xf32>
    %28 = arith.addf %18, %27 : vector<24x128xf32>
    %29 = math.log %28 : vector<24x128xf32>
    %cst_7 = arith.constant 1.000000e-07 : f32
    %30 = vector.broadcast %cst_7 : f32 to vector<24x128xf32>
    %31 = arith.addf %25, %30 : vector<24x128xf32>
    %32 = math.log %31 : vector<24x128xf32>
    %33 = arith.subf %29, %32 : vector<24x128xf32>
    %c0_8 = arith.constant 0 : index
    %c0_9 = arith.constant 0 : index
    %34 = vector.load %arg5[%c0_8, %c0_9] : memref<8x128xf32, #tpu.memory_space<vmem>>, vector<8x128xf32>
    %35 = arith.mulf %26, %26 : vector<24x128xf32>
    %36 = vector.shape_cast %35 : vector<24x128xf32> to vector<3x8x128xf32>
    %cst_10 = arith.constant dense<0.000000e+00> : vector<8x128xf32>
    %37 = vector.multi_reduction <add>, %36, %cst_10 [0] : vector<3x8x128xf32> to vector<8x128xf32>
    %38 = arith.addf %34, %37 : vector<8x128xf32>
    %c0_11 = arith.constant 0 : index
    %c0_12 = arith.constant 0 : index
    %39 = vector.load %arg5[%c0_11, %c0_12] : memref<8x128xf32, #tpu.memory_space<vmem>>, vector<8x128xf32>
    tpu.vector_store %arg5[%c0_11, %c0_12], %38 {strides = array<i32>} : memref<8x128xf32, #tpu.memory_space<vmem>>, vector<8x128xf32>,
    %c0_13 = arith.constant 0 : index
    %c0_14 = arith.constant 0 : index
    %40 = vector.load %arg6[%c0_13, %c0_14] : memref<8x128xf32, #tpu.memory_space<vmem>>, vector<8x128xf32>
    %41 = arith.mulf %18, %18 : vector<24x128xf32>
    %42 = vector.shape_cast %41 : vector<24x128xf32> to vector<3x8x128xf32>
    %cst_15 = arith.constant dense<0.000000e+00> : vector<8x128xf32>
    %43 = vector.multi_reduction <add>, %42, %cst_15 [0] : vector<3x8x128xf32> to vector<8x128xf32>
    %44 = arith.addf %40, %43 : vector<8x128xf32>
    %c0_16 = arith.constant 0 : index
    %c0_17 = arith.constant 0 : index
    %45 = vector.load %arg6[%c0_16, %c0_17] : memref<8x128xf32, #tpu.memory_space<vmem>>, vector<8x128xf32>
    tpu.vector_store %arg6[%c0_16, %c0_17], %44 {strides = array<i32>} : memref<8x128xf32, #tpu.memory_space<vmem>>, vector<8x128xf32>,
    %c0_18 = arith.constant 0 : index
    %c0_19 = arith.constant 0 : index
    %46 = vector.load %arg7[%c0_18, %c0_19] : memref<8x128xf32, #tpu.memory_space<vmem>>, vector<8x128xf32>
    %47 = math.absf %33 : vector<24x128xf32>
    %48 = vector.shape_cast %47 : vector<24x128xf32> to vector<3x8x128xf32>
    %cst_20 = arith.constant dense<0.000000e+00> : vector<8x128xf32>
    %49 = vector.multi_reduction <add>, %48, %cst_20 [0] : vector<3x8x128xf32> to vector<8x128xf32>
    %50 = arith.addf %46, %49 : vector<8x128xf32>
    %c0_21 = arith.constant 0 : index
    %c0_22 = arith.constant 0 : index
    %51 = vector.load %arg7[%c0_21, %c0_22] : memref<8x128xf32, #tpu.memory_space<vmem>>, vector<8x128xf32>
    tpu.vector_store %arg7[%c0_21, %c0_22], %50 {strides = array<i32>} : memref<8x128xf32, #tpu.memory_space<vmem>>, vector<8x128xf32>,
    %c1_i32 = arith.constant 1 : i32
    return
  }
  func.func @transform_0(%arg0: i32, %arg1: i32) -> (i32, i32) {
    %c1_i32 = arith.constant 1 : i32
    %0 = arith.muli %arg0, %c1_i32 : i32
    %1 = arith.addi %0, %arg1 : i32
    %c0_i32 = arith.constant 0 : i32
    %c0_i32_0 = arith.constant 0 : i32
    return %1, %c0_i32 : i32, i32
  }
  func.func @transform_1(%arg0: i32, %arg1: i32) -> (i32, i32) {
    %c1_i32 = arith.constant 1 : i32
    %0 = arith.muli %arg0, %c1_i32 : i32
    %1 = arith.addi %0, %arg1 : i32
    %c0_i32 = arith.constant 0 : i32
    %c0_i32_0 = arith.constant 0 : i32
    return %1, %c0_i32 : i32, i32
  }
  func.func @transform_2(%arg0: i32, %arg1: i32) -> (i32, i32) {
    %c0_i32 = arith.constant 0 : i32
    %c0_i32_0 = arith.constant 0 : i32
    %c0_i32_1 = arith.constant 0 : i32
    return %c0_i32, %c0_i32_0 : i32, i32
  }
  func.func @transform_3(%arg0: i32, %arg1: i32) -> (i32, i32) {
    %c0_i32 = arith.constant 0 : i32
    %c0_i32_0 = arith.constant 0 : i32
    return %arg0, %c0_i32 : i32, i32
  }
  func.func @transform_4(%arg0: i32, %arg1: i32) -> (i32, i32) {
    %c0_i32 = arith.constant 0 : i32
    %c0_i32_0 = arith.constant 0 : i32
    return %arg0, %c0_i32 : i32, i32
  }
  func.func @transform_5(%arg0: i32, %arg1: i32) -> (i32, i32) {
    %c0_i32 = arith.constant 0 : i32
    %c0_i32_0 = arith.constant 0 : i32
    return %arg0, %c0_i32 : i32, i32
  }
}

</mosaic_0001>

<bundles_post_ra>
// kernel: tpu_custom_call.1
= control target key start
LH: loop header
LB: loop body
LE: loop exit
PB: predicated region body
PF: predicated region fallthrough
CT: control target
= control target key end

     0   :  { %11 = vsyncpa [#allocation3], 0  ;;  %s752_s0 = inlined_call_operand.hbm [shape: bf16[24,128], index: 0, kind: input, shape index: {}]   ;;  %s753_s1 = inlined_call_operand.hbm [shape: bf16[24,128], index: 1, kind: input, shape index: {}]   ;;  %s754_s2 = inlined_call_operand.hbm [shape: bf16[128,256], index: 2, kind: input, shape index: {}]   ;;  %s755_s3 = inlined_call_operand.hbm [shape: f32[8,128], index: 3, kind: output, shape index: {0}]   ;;  %s756_s4 = inlined_call_operand.hbm [shape: f32[8,128], index: 4, kind: output, shape index: {1}]   ;;  %s757_s5 = inlined_call_operand.hbm [shape: f32[8,128], index: 5, kind: output, shape index: {2}]  }
   0x1   :  { %12 = vsyncpa [#allocation6], 0 }
   0x2   :  { %13 = vsyncpa [#allocation4], 0 }
   0x3   :  { %14 = vsyncpa [#allocation10], 0  ;;  %s625_s18 = smov [#allocation5]   ;;  %s626_s20 = smov [#allocation2]  }
   0x4   :  { %s40_s19 = sshll.u32 %s625_s18, 4  ;;  %s24_s21 = sshll.u32 %s626_s20, 4  ;;  %s41_s19 = int_to_ptr.vmem [resolvable:$true] %s40_s19  ;;  %s666_s21 = int_to_ptr.vmem [resolvable:$true] %s24_s21 }
   0x5   :  { %s485_s24 = scalar_lea.hbm %s753_s1, 192 }
   0x6   :  { %p486_p0 = scmp.ne.s32.totalorder %s753_s1, %s485_s24  ;;  %p489_p1 = scmp.lt.u32.totalorder %s485_s24, %s753_s1 }
   0x8   :  { %p491_p2 = pnand %p489_p1, %p486_p0 }
   0xa   :  { %494 = shalt.err (!%p491_p2)
}
   0xb   :  { %s495_s29 = scalar_lea.vmem %s41_s19, 192  ;;  %p500_p4 = scmp.lt.s32.totalorder %s41_s19, %s41_s19 }
   0xc   :  { %p496_p3 = scmp.ne.s32.totalorder %s41_s19, %s495_s29  ;;  %p501_p5 = scmp.lt.s32.totalorder %s495_s29, %s495_s29 }
   0xe   :  { %p502_p6 = por %p501_p5, %p500_p4 }
  0x10   :  { %p503_p7 = pnand %p502_p6, %p496_p3 }
  0x12   :  { %506 = shalt.err (!%p503_p7)
}
  0x13   :  { %s627_s30 = smov 64   ;;  %s628_s6 = smov 4  }
  0x14   :  { %46 = dma.hbm_to_vmem [thread:$0]  %s753_s1, 192, %s41_s19, [#allocation6], %s627_s30, %s627_s30, %s628_s6  }
  0x15   :  { %s507_s11 = scalar_lea.hbm %s752_s0, 192 }
  0x16   :  { %p508_p8 = scmp.ne.s32.totalorder %s752_s0, %s507_s11  ;;  %p511_p9 = scmp.lt.u32.totalorder %s507_s11, %s752_s0 }
  0x18   :  { %p513_p10 = pnand %p511_p9, %p508_p8 }
  0x1a   :  { %516 = shalt.err (!%p513_p10)
}
  0x1b   :  { %s517_s16 = scalar_lea.vmem %s666_s21, 192  ;;  %p522_p12 = scmp.lt.s32.totalorder %s666_s21, %s666_s21 }
  0x1c   :  { %p518_p11 = scmp.ne.s32.totalorder %s666_s21, %s517_s16  ;;  %p523_p13 = scmp.lt.s32.totalorder %s517_s16, %s517_s16 }
  0x1e   :  { %p524_p0 = por %p523_p13, %p522_p12 }
  0x20   :  { %p525_p1 = pnand %p524_p0, %p518_p11 }
  0x22   :  { %528 = shalt.err (!%p525_p1)
}
  0x23   :  { %30 = dma.hbm_to_vmem [thread:$0]  %s752_s0, 192, %s666_s21, [#allocation3], %s627_s30, %s627_s30, %s628_s6  }
  0x24   :  { %s629_s18 = smov [#allocation7]   ;;  %s529_s23 = scalar_lea.hbm %s754_s2, 2048 }
  0x25   :  { %s52_s19 = sshll.u32 %s629_s18, 4  ;;  %p530_p2 = scmp.ne.s32.totalorder %s754_s2, %s529_s23  ;;  %s53_s19 = int_to_ptr.vmem [resolvable:$true] %s52_s19 }
  0x26   :  { %p533_p3 = scmp.lt.u32.totalorder %s529_s23, %s754_s2 }
  0x28   :  { %p535_p4 = pnand %p533_p3, %p530_p2 }
  0x2a   :  { %538 = shalt.err (!%p535_p4)
}
  0x2b   :  { %s539_s28 = scalar_lea.vmem %s53_s19, 2048  ;;  %p544_p6 = scmp.lt.s32.totalorder %s53_s19, %s53_s19 }
  0x2c   :  { %p540_p5 = scmp.ne.s32.totalorder %s53_s19, %s539_s28  ;;  %p545_p7 = scmp.lt.s32.totalorder %s539_s28, %s539_s28 }
  0x2e   :  { %p546_p8 = por %p545_p7, %p544_p6 }
  0x30   :  { %p547_p9 = pnand %p546_p8, %p540_p5 }
  0x32   :  { %550 = shalt.err (!%p547_p9)
}
  0x33   :  { %s630_s0 = smov 128   ;;  %s631_s21 = smov 8  }
  0x34   :  { %58 = dma.hbm_to_vmem [thread:$0]  %s754_s2, 2048, %s53_s19, [#allocation6], %s630_s0, %s630_s0, %s631_s21  }
  0x35   :  { %617 = dma.done.wait [#allocation3], 192  }
  0x36   :  { %618 = vsyncadd [#allocation3], 4294967104 }
  0x37   :  { %619 = dma.done.wait [#allocation6], 2240  }
  0x38   :  { %620 = vsyncadd [#allocation6], 4294965056  ;;  %v632_v0 = vmov 0   ;;  %v445_v1 = vld [vmem:[#allocation7 + $0x4] ss:$8 sps:$4 sm:$0xff]   ;;  %v470_v18 = vld [vmem:[#allocation5] sm:$0xff]  }
  0x39   :  { %221 = vmatprep.mubr.bf16.mxu0 %v632_v0  ;;  %285 = vmatprep.mubr.bf16.mxu1 %v632_v0  ;;  %v447_v2 = vld [vmem:[#allocation7] ss:$8 sps:$4 sm:$0xff]   ;;  %v448_v3 = vld [vmem:[#allocation7 + $0x14] ss:$8 sps:$4 sm:$0xff]   ;;  %v450_v4 = vld [vmem:[#allocation7 + $0x10] ss:$8 sps:$4 sm:$0xff]  }
  0x3a   :  { %189 = vmatprep.subr.bf16.mxu0 %v445_v1  ;;  %253 = vmatprep.subr.bf16.mxu1 %v445_v1  ;;  %v451_v5 = vld [vmem:[#allocation7 + $0x24] ss:$8 sps:$4 sm:$0xff]   ;;  %v453_v6 = vld [vmem:[#allocation7 + $0x20] ss:$8 sps:$4 sm:$0xff]   ;;  %v454_v7 = vld [vmem:[#allocation7 + $0x34] ss:$8 sps:$4 sm:$0xff]  }
  0x3b   :  { %190 = vmatpush1.bf16.msra.mxu0 %v447_v2  ;;  %254 = vmatpush1.bf16.msra.mxu1 %v447_v2  ;;  %v456_v8 = vld [vmem:[#allocation7 + $0x30] ss:$8 sps:$4 sm:$0xff]   ;;  %v457_v9 = vld [vmem:[#allocation7 + $0x44] ss:$8 sps:$4 sm:$0xff]   ;;  %v459_v10 = vld [vmem:[#allocation7 + $0x40] ss:$8 sps:$4 sm:$0xff]  }
  0x3c   :  { %191 = vmatprep.subr.bf16.mxu0 %v448_v3  ;;  %255 = vmatprep.subr.bf16.mxu1 %v448_v3  ;;  %v460_v11 = vld [vmem:[#allocation7 + $0x54] ss:$8 sps:$4 sm:$0xff]   ;;  %v462_v12 = vld [vmem:[#allocation7 + $0x50] ss:$8 sps:$4 sm:$0xff]   ;;  %v463_v13 = vld [vmem:[#allocation7 + $0x64] ss:$8 sps:$4 sm:$0xff]  }
  0x3d   :  { %v465_v14 = vld [vmem:[#allocation7 + $0x60] ss:$8 sps:$4 sm:$0xff]   ;;  %v466_v15 = vld [vmem:[#allocation7 + $0x74] ss:$8 sps:$4 sm:$0xff]   ;;  %v468_v16 = vld [vmem:[#allocation7 + $0x70] ss:$8 sps:$4 sm:$0xff]  }
  0x3e   :  { %v469_v17 = vld [vmem:[#allocation2] sm:$0xff]   ;;  %v471_v19 = vld [vmem:[#allocation2 + $0x8] ss:$0 sps:$4 sm:$0xff]   ;;  %v472_v20 = vld [vmem:[#allocation5 + $0x8] ss:$0 sps:$4 sm:$0xff]   ;;  %s633_s2 = smov [#allocation9]  }
  0x3f   :  { %192 = vmatpush1.bf16.msra.mxu0 %v450_v4  ;;  %256 = vmatpush1.bf16.msra.mxu1 %v450_v4  ;;  %s386_s6 = sshll.u32 %s633_s2, 4  ;;  %s634_s7 = smov [#allocation8]   ;;  %s387_s6 = int_to_ptr.vmem [resolvable:$true] %s386_s6 }
  0x40   :  { %193 = vmatprep.subr.bf16.mxu0 %v451_v5  ;;  %257 = vmatprep.subr.bf16.mxu1 %v451_v5  ;;  %s376_s8 = sshll.u32 %s634_s7, 4  ;;  %s551_s9 = scalar_lea.vmem %s387_s6, 128  ;;  %s709_s8 = int_to_ptr.vmem [resolvable:$true] %s376_s8 }
  0x41   :  { %p552_p10 = scmp.ne.s32.totalorder %s387_s6, %s551_s9  ;;  %p556_p11 = scmp.lt.s32.totalorder %s387_s6, %s387_s6 }
  0x42   :  { %p557_p12 = scmp.lt.s32.totalorder %s551_s9, %s551_s9 }
  0x43   :  { %194 = vmatpush1.bf16.msra.mxu0 %v453_v6  ;;  %258 = vmatpush1.bf16.msra.mxu1 %v453_v6 }
  0x44   :  { %195 = vmatprep.subr.bf16.mxu0 %v454_v7  ;;  %259 = vmatprep.subr.bf16.mxu1 %v454_v7  ;;  %p558_p13 = por %p557_p12, %p556_p11 }
  0x46   :  { %p559_p0 = pnand %p558_p13, %p552_p10 }
  0x47   :  { %196 = vmatpush1.bf16.msra.mxu0 %v456_v8  ;;  %260 = vmatpush1.bf16.msra.mxu1 %v456_v8 }
  0x48   :  { %197 = vmatprep.subr.bf16.mxu0 %v457_v9  ;;  %261 = vmatprep.subr.bf16.mxu1 %v457_v9 }
  0x4b   :  { %198 = vmatpush1.bf16.msra.mxu0 %v459_v10  ;;  %262 = vmatpush1.bf16.msra.mxu1 %v459_v10 }
  0x4c   :  { %199 = vmatprep.subr.bf16.mxu0 %v460_v11  ;;  %263 = vmatprep.subr.bf16.mxu1 %v460_v11 }
  0x4f   :  { %200 = vmatpush1.bf16.msra.mxu0 %v462_v12  ;;  %264 = vmatpush1.bf16.msra.mxu1 %v462_v12 }
  0x50   :  { %201 = vmatprep.subr.bf16.mxu0 %v463_v13  ;;  %265 = vmatprep.subr.bf16.mxu1 %v463_v13 }
  0x53   :  { %202 = vmatpush1.bf16.msra.mxu0 %v465_v14  ;;  %266 = vmatpush1.bf16.msra.mxu1 %v465_v14 }
  0x54   :  { %203 = vmatprep.subr.bf16.mxu0 %v466_v15  ;;  %267 = vmatprep.subr.bf16.mxu1 %v466_v15 }
  0x57   :  { %204 = vmatpush1.bf16.msra.mxu0 %v468_v16  ;;  %268 = vmatpush1.bf16.msra.mxu1 %v468_v16 }
  0x5a   :  { %222 = vmatmul.mubr.bf16.vlgmr.msra.gmra.mrb[0].mxu0 %v469_v17  ;;  %286 = vmatmul.mubr.bf16.vlgmr.msra.gmra.mrb[0].mxu1 %v470_v18 }
  0x5b   :  { %231 = vmatprep.mubr.bf16.mxu0 %v632_v0  ;;  %295 = vmatprep.mubr.bf16.mxu1 %v632_v0 }
  0x62   :  { %232 = vmatmul.mubr.bf16.gmra.mrb[4].mxu0 %v471_v19  ;;  %296 = vmatmul.mubr.bf16.gmra.mrb[4].mxu1 %v472_v20 }
 0x12d   :  { %v223_v21 = vpop.f32.mrb[0].mxu0  ;;  %v287_v22 = vpop.f32.mrb[0].mxu1 }
 0x12e   :  { %v304_v23 = vmul.f32 %v223_v21, %v223_v21  ;;  %v313_v24 = vmul.f32 %v287_v22, %v287_v22  ;;  %v225_v25 = vpop.f32.mrb[1].mxu0  ;;  %v289_v26 = vpop.f32.mrb[1].mxu1 }
 0x12f   :  { %v307_v27 = vmul.f32 %v225_v25, %v225_v25  ;;  %v316_v28 = vmul.f32 %v289_v26, %v289_v26  ;;  %v227_v29 = vpop.f32.mrb[2].mxu0  ;;  %v291_v30 = vpop.f32.mrb[2].mxu1 }
 0x130   :  { %v305_v31 = vmul.f32 %v227_v29, %v227_v29  ;;  %v314_v32 = vmul.f32 %v291_v30, %v291_v30  ;;  %v229_v33 = vpop.f32.mrb[3].mxu0  ;;  %v293_v34 = vpop.f32.mrb[3].mxu1 }
 0x131   :  { %v310_v35 = vadd.f32 %v307_v27, %v304_v23  ;;  %v319_v36 = vadd.f32 %v316_v28, %v313_v24  ;;  %v308_v37 = vmul.f32 %v229_v33, %v229_v33  ;;  %v317_v38 = vmul.f32 %v293_v34, %v293_v34 }
 0x133   :  { %v325_v39 = vadd.f32 1e-07, %v310_v35  ;;  %v322_v40 = vsub.f32 %v310_v35, %v319_v36  ;;  %v334_v41 = vadd.f32 1e-07, %v319_v36  ;;  %v311_v42 = vadd.f32 %v308_v37, %v305_v31 }
 0x134   :  { %v320_v43 = vadd.f32 %v317_v38, %v314_v32  ;;  %v355_v44 = vmul.f32 %v310_v35, %v310_v35 }
 0x135   :  { %473 = vlog2.f32 %v325_v39  ;;  %v347_v45 = vmul.f32 %v322_v40, %v322_v40  ;;  %v233_v46 = vpop.f32.mrb[4].mxu0  ;;  %v297_v47 = vpop.f32.mrb[4].mxu1  ;;  %v326_v48 = vadd.f32 1e-07, %v311_v42  ;;  %v356_v49 = vmul.f32 %v311_v42, %v311_v42 }
 0x136   :  { %475 = vlog2.f32 %v334_v41  ;;  %v323_v50 = vsub.f32 %v311_v42, %v320_v43  ;;  %v235_v51 = vpop.f32.mrb[5].mxu0  ;;  %v299_v52 = vpop.f32.mrb[5].mxu1  ;;  %v335_v53 = vadd.f32 1e-07, %v320_v43  ;;  %v306_v54 = vmul.f32 %v233_v46, %v233_v46 }
 0x137   :  { %v315_v55 = vmul.f32 %v297_v47, %v297_v47  ;;  %v309_v56 = vmul.f32 %v235_v51, %v235_v51  ;;  %v237_v57 = vpop.f32.mrb[6].mxu0  ;;  %v301_v58 = vpop.f32.mrb[6].mxu1  ;;  %477 = vlog2.f32 %v326_v48  ;;  %v358_v59 = vadd.f32 %v356_v49, %v355_v44 }
 0x138   :  { %v348_v60 = vmul.f32 %v323_v50, %v323_v50  ;;  %v318_v61 = vmul.f32 %v299_v52, %v299_v52  ;;  %v238_v62 = vpop.f32.mrb[7].mxu0  ;;  %v302_v63 = vpop.f32.mrb[7].mxu1  ;;  %479 = vlog2.f32 %v335_v53 }
 0x139   :  { %v312_v0 = vadd.f32 %v309_v56, %v306_v54 }
 0x13a   :  { %v350_v1 = vadd.f32 %v348_v60, %v347_v45  ;;  %v321_v2 = vadd.f32 %v318_v61, %v315_v55 }
 0x13b   :  { %v327_v3 = vadd.f32 1e-07, %v312_v0  ;;  %v357_v4 = vmul.f32 %v312_v0, %v312_v0 }
 0x13c   :  { %v324_v5 = vsub.f32 %v312_v0, %v321_v2  ;;  %v336_v6 = vadd.f32 1e-07, %v321_v2 }
 0x13d   :  { %481 = vlog2.f32 %v327_v3  ;;  %v359_v7 = vadd.f32 %v358_v59, %v357_v4 }
 0x13e   :  { %483 = vlog2.f32 %v336_v6  ;;  %v349_v8 = vmul.f32 %v324_v5, %v324_v5 }
 0x13f   :  { %v474_v9 = vpop.eup %473  ;;  %361 = vst [vmem:[#allocation9] sm:$0xff] %v359_v7 }
 0x140   :  { %v476_v10 = vpop.eup %475  ;;  %v329_v11 = vmul.f32 0.6931472, %v474_v9  ;;  %v351_v12 = vadd.f32 %v350_v1, %v349_v8 }
 0x141   :  { %v338_v13 = vmul.f32 0.6931472, %v476_v10  ;;  %v478_v14 = vpop.eup %477 }
 0x142   :  { %562 = shalt.err (!%p559_p0)
}
 0x143   :  { %s563_s12 = scalar_lea.hbm %s756_s4, 128 }
 0x144   :  { %p564_p1 = scmp.ne.s32.totalorder %s756_s4, %s563_s12  ;;  %p567_p2 = scmp.lt.u32.totalorder %s563_s12, %s756_s4 }
 0x146   :  { %p569_p3 = pnand %p567_p2, %p564_p1 }
 0x148   :  { %572 = shalt.err (!%p569_p3)
}
 0x149   :  { %389 = dma.vmem_to_hbm [thread:$0]  %s387_s6, 128, %s756_s4, [#allocation10]   ;;  %v480_v15 = vpop.eup %479  ;;  %v343_v16 = vsub.f32 %v329_v11, %v338_v13  ;;  %v331_v17 = vmul.f32 0.6931472, %v478_v14  ;;  %353 = vst [vmem:[#allocation8] sm:$0xff] %v351_v12 }
 0x14a   :  { %v340_v18 = vmul.f32 0.6931472, %v480_v15  ;;  %s573_s18 = scalar_lea.vmem %s709_s8, 128  ;;  %p578_p5 = scmp.lt.s32.totalorder %s709_s8, %s709_s8 }
 0x14b   :  { %p574_p4 = scmp.ne.s32.totalorder %s709_s8, %s573_s18  ;;  %p579_p6 = scmp.lt.s32.totalorder %s573_s18, %s573_s18 }
 0x14d   :  { %p580_p7 = por %p579_p6, %p578_p5 }
 0x14f   :  { %p581_p8 = pnand %p580_p7, %p574_p4 }
 0x151   :  { %584 = shalt.err (!%p581_p8)
}
 0x152   :  { %s585_s22 = scalar_lea.hbm %s755_s3, 128 }
 0x153   :  { %p586_p9 = scmp.ne.s32.totalorder %s755_s3, %s585_s22  ;;  %p589_p10 = scmp.lt.u32.totalorder %s585_s22, %s755_s3 }
 0x155   :  { %p591_p11 = pnand %p589_p10, %p586_p9 }
 0x157   :  { %594 = shalt.err (!%p591_p11)
}
 0x158   :  { %379 = dma.vmem_to_hbm [thread:$0]  %s709_s8, 128, %s755_s3, [#allocation4]   ;;  %v344_v19 = vsub.f32 %v331_v17, %v340_v18  ;;  %v482_v20 = vpop.eup %481  ;;  %v363_v22 = vand.u32 2147483647, %v343_v16 }
 0x159   :  { %v484_v21 = vpop.eup %483  ;;  %v333_v24 = vmul.f32 0.6931472, %v482_v20  ;;  %s635_s28 = smov [#allocation11]  }
 0x15a   :  { %v364_v23 = vand.u32 2147483647, %v344_v19  ;;  %v342_v25 = vmul.f32 0.6931472, %v484_v21  ;;  %s396_s0 = sshll.u32 %s635_s28, 4  ;;  %s397_s0 = int_to_ptr.vmem [resolvable:$true] %s396_s0 }
 0x15b   :  { %s595_s21 = scalar_lea.vmem %s397_s0, 128  ;;  %p600_p13 = scmp.lt.s32.totalorder %s397_s0, %s397_s0 }
 0x15c   :  { %v366_v26 = vadd.f32 %v364_v23, %v363_v22  ;;  %v345_v27 = vsub.f32 %v333_v24, %v342_v25  ;;  %p596_p12 = scmp.ne.s32.totalorder %s397_s0, %s595_s21  ;;  %p601_p0 = scmp.lt.s32.totalorder %s595_s21, %s595_s21 }
 0x15e   :  { %v365_v28 = vand.u32 2147483647, %v345_v27  ;;  %p602_p1 = por %p601_p0, %p600_p13 }
 0x160   :  { %v367_v29 = vadd.f32 %v366_v26, %v365_v28  ;;  %p603_p2 = pnand %p602_p1, %p596_p12 }
 0x162   :  { %369 = vst [vmem:[#allocation11] sm:$0xff] %v367_v29 }
 0x163   :  { %606 = shalt.err (!%p603_p2)
}
 0x164   :  { %s607_s30 = scalar_lea.hbm %s757_s5, 128 }
 0x165   :  { %p608_p3 = scmp.ne.s32.totalorder %s757_s5, %s607_s30  ;;  %p611_p4 = scmp.lt.u32.totalorder %s607_s30, %s757_s5 }
 0x167   :  { %p613_p5 = pnand %p611_p4, %p608_p3 }
 0x169   :  { %616 = shalt.err (!%p613_p5)
}
 0x16a   :  { %399 = dma.vmem_to_hbm [thread:$0]  %s397_s0, 128, %s757_s5, [#allocation10]  }
 0x16b   :  { %621 = dma.done.wait [#allocation4], 128  }
 0x16c   :  { %622 = vsyncadd [#allocation4], 4294967168 }
 0x16d   :  { %623 = dma.done.wait [#allocation10], 256  }
 0x16e   :  { %624 = vsyncadd [#allocation10], 4294967040 }
 0x16f   :  { %409 = vsyncpa [#allocation3], 1 }
 0x170   :  { %410 = vsyncpa [#allocation6], 1 }
 0x171   :  { %411 = vsyncpa [#allocation4], 1 }
 0x172   :  { %412 = vsyncpa [#allocation10], 1 }

</bundles_post_ra>
